<compile_context>
chip_gen: v6e
topology: v6e:2x2x1
jax: 0.10.0
libtpu: 0.0.40
codegen_flags: <defaults>
</compile_context>

<pallas_src>
import jax
import jax.numpy as jnp
from jax import lax
from jax.experimental import pallas as pl
from jax.experimental.pallas import tpu as pltpu

SMOOTH = 0.001
_LANES = 128
_TARGET_F32_BYTES = 4 * 1024 * 1024    # per-input f32 working set per grid step
_VMEM_LIMIT_BYTES = 48 * 1024 * 1024   # 2 in x 2 buf x <=4MiB + temps, < v7x 64 MiB


def _dice_partial_sums(y_pred_flat, y_true_flat):
    """Streams (B, N) inputs (N % 128 == 0) through a Pallas reduction.

    Returns (B, n_split, 2, 128) float32 lane partials:
      [..., 0, :] -> partial sums of y_pred * y_true   (intersection)
      [..., 1, :] -> partial sums of y_pred + y_true   (denominator)
    """
    B, N = y_pred_flat.shape
    assert N % _LANES == 0
    rows = N // _LANES

    yp = y_pred_flat.reshape(B, rows, _LANES)   # free row-major reshape
    yt = y_true_flat.reshape(B, rows, _LANES)

    # Sublane granule: 8 for 32-bit, 16 for 16-bit, 32 for 8-bit streamed data.
    min_itemsize = min(yp.dtype.itemsize, yt.dtype.itemsize)
    granule = 8 * max(1, 4 // max(1, min_itemsize))

    # Size tr off the f32 working set so cast/product temporaries stay small
    # regardless of input dtype; clamp to rows rounded up to a legal granule.
    tr = max(granule, (_TARGET_F32_BYTES // (_LANES * 4)) // granule * granule)
    rows_rounded = pl.cdiv(rows, granule) * granule
    tr = min(tr, rows_rounded)
    n_tiles = pl.cdiv(rows, tr)

    # v7x: with B == 1 split the reduction axis across the two TensorCores.
    n_split = 2 if (B == 1 and n_tiles >= 2) else 1
    tiles_per_split = pl.cdiv(n_tiles, n_split)
    # True if any tile overruns `rows` (partial last tile and/or overflow
    # tiles created by the core split).
    has_tail = (n_split * tiles_per_split * tr) != rows

    def kernel(pred_ref, true_ref, out_ref, acc_i_ref, acc_s_ref):
        s = pl.program_id(1)
        j = pl.program_id(2)

        @pl.when(j == 0)
        def _():
            acc_i_ref[...] = jnp.zeros_like(acc_i_ref)
            acc_s_ref[...] = jnp.zeros_like(acc_s_ref)

        p = pred_ref[...].astype(jnp.float32)
        t = true_ref[...].astype(jnp.float32)

        def fold(x):
            # (tr,128) -> (tr//8, 8, 128) only splits the sublane dim (free);
            # the axis-0 reduce is plain vreg adds on the VPU, keeping the
            # cross-sublane XLU reduce to once per sample (in the finalize).
            return jnp.sum(x.reshape(tr // 8, 8, _LANES), axis=0)

        def accumulate(prod, ssum):
            acc_i_ref[...] += fold(prod)
            acc_s_ref[...] += fold(ssum)

        if not has_tail:
            accumulate(p * t, p + t)
        else:
            jg = s * tiles_per_split + j          # global row-tile index
            needs_mask = (jg + 1) * tr > rows     # only last/overflow tiles

            @pl.when(jnp.logical_not(needs_mask))
            def _():
                accumulate(p * t, p + t)

            @pl.when(needs_mask)
            def _():
                rem = rows - jg * tr              # may be <= 0 (overflow tile)
                row_ids = lax.broadcasted_iota(jnp.int32, (tr, _LANES), 0)
                valid = row_ids < rem
                accumulate(jnp.where(valid, p * t, 0.0),
                           jnp.where(valid, p + t, 0.0))

        @pl.when(j == pl.num_programs(2) - 1)
        def _():
            # Single XLU sublane reduce per sample; lane reduce done in JAX.
            out_ref[0:1, :] = jnp.sum(acc_i_ref[...], axis=0, keepdims=True)
            out_ref[1:2, :] = jnp.sum(acc_s_ref[...], axis=0, keepdims=True)

    in_bytes = yp.size * yp.dtype.itemsize + yt.size * yt.dtype.itemsize
    out_bytes = B * n_split * 2 * _LANES * 4
    cost = pl.CostEstimate(
        flops=4 * B * rows * _LANES,
        transcendentals=0,
        bytes_accessed=in_bytes + out_bytes,
    )

    def in_map(b, s, j):
        # Clamp so overflow tiles from the core split stay in-bounds; their
        # contents are fully masked in-kernel.
        return (b, jnp.minimum(s * tiles_per_split + j, n_tiles - 1), 0)

    return pl.pallas_call(
        kernel,
        out_shape=jax.ShapeDtypeStruct((B, n_split, 2, _LANES), jnp.float32),
        grid_spec=pltpu.PrefetchScalarGridSpec(
            num_scalar_prefetch=0,
            grid=(B, n_split, tiles_per_split),
            in_specs=[
                pl.BlockSpec((pl.Squeezed(), tr, _LANES), in_map),
                pl.BlockSpec((pl.Squeezed(), tr, _LANES), in_map),
            ],
            out_specs=pl.BlockSpec(
                (pl.Squeezed(), pl.Squeezed(), 2, _LANES),
                lambda b, s, j: (b, s, 0, 0)),
            scratch_shapes=[pltpu.VMEM((8, _LANES), jnp.float32),
                            pltpu.VMEM((8, _LANES), jnp.float32)],
        ),
        compiler_params=pltpu.CompilerParams(
            dimension_semantics=("parallel", "parallel", "arbitrary"),
            vmem_limit_bytes=_VMEM_LIMIT_BYTES,
        ),
        cost_estimate=cost,
    )(yp, yt)


def dice_loss(y_pred, y_true, smooth=SMOOTH, min_pallas_elems=0):
    """Matches DiceLoss.forward(y_pred, y_true) from losses3D/losses_1.py.

    Inputs may be f32 / bf16 (or an int mask for y_true); the kernel casts to
    f32 internally, so lower-precision inputs halve the streamed bytes.
    Set `min_pallas_elems` (e.g. 1 << 16) to take a plain-JAX fast path for
    tiny inputs where kernel-launch overhead dominates.
    """
    B = y_true.shape[0]
    m2 = y_pred.reshape(B, -1)   # y_pred.view(batch_size, -1)
    m1 = y_true.reshape(B, -1)   # y_true.view(batch_size, -1)
    N = m1.shape[1]
    N_main = (N // _LANES) * _LANES

    if N < min_pallas_elems or N_main == 0:
        m1f = m1.astype(jnp.float32)
        m2f = m2.astype(jnp.float32)
        intersection = jnp.sum(m1f * m2f, axis=1)
        denom = jnp.sum(m1f, axis=1) + jnp.sum(m2f, axis=1)
    else:
        if N_main < N:
            # Kernel handles the 128-aligned prefix; the <=127-element tail is
            # summed in plain JAX and folded in below.
            # TODO(synk): the prefix slice still copies ~N_main elements per
            # tensor before the kernel; pad/align at data-prep time (or go
            # manual-DMA with pl.ANY) to make this a true single HBM pass.
            tp = m2[:, N_main:].astype(jnp.float32)
            tt = m1[:, N_main:].astype(jnp.float32)
            tail = (jnp.sum(tp * tt, axis=1), jnp.sum(tp + tt, axis=1))
            m2k, m1k = m2[:, :N_main], m1[:, :N_main]
        else:
            tail = None
            m2k, m1k = m2, m1

        partials = _dice_partial_sums(m2k, m1k)        # (B, n_split, 2, 128)
        intersection = jnp.sum(partials[:, :, 0, :], axis=(1, 2))
        denom = jnp.sum(partials[:, :, 1, :], axis=(1, 2))
        if tail is not None:
            intersection = intersection + tail[0]
            denom = denom + tail[1]

    score = (2.0 * intersection + smooth) / (denom + smooth)
    score = jnp.sum(score) / B
    return 1.0 - score


if __name__ == "__main__":
    key = jax.random.PRNGKey(0)
    k1, k2 = jax.random.split(key)

    # Small NCHW-style shapes: batch=2, channels=4, spatial=16x16.
    shape = (2, 4, 16, 16)
    y_pred = jax.nn.sigmoid(jax.random.normal(k1, shape, dtype=jnp.float32))
    y_true = (jax.random.uniform(k2, shape) > 0.5).astype(jnp.float32)

    loss = jax.block_until_ready(dice_loss(y_pred, y_true))

    # Plain-JAX reference check of the forward semantics.
    B = shape[0]
    m1 = y_true.reshape(B, -1)
    m2 = y_pred.reshape(B, -1)
    ref_score = (2.0 * jnp.sum(m1 * m2, axis=1) + SMOOTH) / (
        jnp.sum(m1, axis=1) + jnp.sum(m2, axis=1) + SMOOTH)
    ref_loss = 1.0 - jnp.sum(ref_score) / B
    assert jnp.allclose(loss, ref_loss, rtol=1e-5, atol=1e-5), (loss, ref_loss)

    print("KERNEL_OK")
</pallas_src>

<mosaic_0001>
module attributes {stable_mosaic.version = 11 : i64} {
  func.func @kernel(%arg0: i32, %arg1: i32, %arg2: i32, %arg3: memref<1x8x128xf32, #tpu.memory_space<vmem>>, %arg4: memref<1x8x128xf32, #tpu.memory_space<vmem>>, %arg5: memref<1x1x2x128xf32, #tpu.memory_space<vmem>>, %arg6: memref<8x128xf32, #tpu.memory_space<vmem>>, %arg7: memref<8x128xf32, #tpu.memory_space<vmem>>) attributes {dimension_semantics = [#tpu.dimension_semantics<parallel>, #tpu.dimension_semantics<parallel>, #tpu.dimension_semantics<arbitrary>], iteration_bounds = array<i64: 2, 1, 1>, scalar_prefetch = 0 : i64, scratch_operands = 2 : i64, tpu.core_type = #tpu.core_type<tc>, window_params = [{transform_indices = @transform_0, window_bounds = array<i64: 1, 8, 128>}, {transform_indices = @transform_1, window_bounds = array<i64: 1, 8, 128>}, {transform_indices = @transform_2, window_bounds = array<i64: 1, 1, 2, 128>}]} {
    %c0_i32 = arith.constant 0 : i32
    %0 = arith.cmpi eq, %arg2, %c0_i32 : i32
    %1 = arith.extui %0 : i1 to i32
    %c0_i32_0 = arith.constant 0 : i32
    %2 = arith.cmpi ne, %1, %c0_i32_0 : i32
    scf.if %2 {
      %cst_17 = arith.constant 0.000000e+00 : f32
      %22 = vector.broadcast %cst_17 : f32 to vector<8x128xf32>
      %c0_18 = arith.constant 0 : index
      %c0_19 = arith.constant 0 : index
      %23 = vector.load %arg6[%c0_18, %c0_19] : memref<8x128xf32, #tpu.memory_space<vmem>>, vector<8x128xf32>
      tpu.vector_store %arg6[%c0_18, %c0_19], %22 {strides = array<i32>} : memref<8x128xf32, #tpu.memory_space<vmem>>, vector<8x128xf32>,
      %cst_20 = arith.constant 0.000000e+00 : f32
      %24 = vector.broadcast %cst_20 : f32 to vector<8x128xf32>
      %c0_21 = arith.constant 0 : index
      %c0_22 = arith.constant 0 : index
      %25 = vector.load %arg7[%c0_21, %c0_22] : memref<8x128xf32, #tpu.memory_space<vmem>>, vector<8x128xf32>
      tpu.vector_store %arg7[%c0_21, %c0_22], %24 {strides = array<i32>} : memref<8x128xf32, #tpu.memory_space<vmem>>, vector<8x128xf32>,
    } else {
    }
    %c0 = arith.constant 0 : index
    %c0_1 = arith.constant 0 : index
    %c0_2 = arith.constant 0 : index
    %3 = vector.load %arg3[%c0, %c0_1, %c0_2] : memref<1x8x128xf32, #tpu.memory_space<vmem>>, vector<1x8x128xf32>
    %4 = vector.shape_cast %3 : vector<1x8x128xf32> to vector<8x128xf32>
    %c0_3 = arith.constant 0 : index
    %c0_4 = arith.constant 0 : index
    %c0_5 = arith.constant 0 : index
    %5 = vector.load %arg4[%c0_3, %c0_4, %c0_5] : memref<1x8x128xf32, #tpu.memory_space<vmem>>, vector<1x8x128xf32>
    %6 = vector.shape_cast %5 : vector<1x8x128xf32> to vector<8x128xf32>
    %7 = arith.mulf %4, %6 : vector<8x128xf32>
    %8 = arith.addf %4, %6 : vector<8x128xf32>
    %c0_6 = arith.constant 0 : index
    %c0_7 = arith.constant 0 : index
    %9 = vector.load %arg6[%c0_6, %c0_7] : memref<8x128xf32, #tpu.memory_space<vmem>>, vector<8x128xf32>
    %10 = vector.shape_cast %7 : vector<8x128xf32> to vector<1x8x128xf32>
    %cst = arith.constant dense<0.000000e+00> : vector<8x128xf32>
    %11 = vector.multi_reduction <add>, %10, %cst [0] : vector<1x8x128xf32> to vector<8x128xf32>
    %12 = arith.addf %9, %11 : vector<8x128xf32>
    %c0_8 = arith.constant 0 : index
    %c0_9 = arith.constant 0 : index
    %13 = vector.load %arg6[%c0_8, %c0_9] : memref<8x128xf32, #tpu.memory_space<vmem>>, vector<8x128xf32>
    tpu.vector_store %arg6[%c0_8, %c0_9], %12 {strides = array<i32>} : memref<8x128xf32, #tpu.memory_space<vmem>>, vector<8x128xf32>,
    %c0_10 = arith.constant 0 : index
    %c0_11 = arith.constant 0 : index
    %14 = vector.load %arg7[%c0_10, %c0_11] : memref<8x128xf32, #tpu.memory_space<vmem>>, vector<8x128xf32>
    %15 = vector.shape_cast %8 : vector<8x128xf32> to vector<1x8x128xf32>
    %cst_12 = arith.constant dense<0.000000e+00> : vector<8x128xf32>
    %16 = vector.multi_reduction <add>, %15, %cst_12 [0] : vector<1x8x128xf32> to vector<8x128xf32>
    %17 = arith.addf %14, %16 : vector<8x128xf32>
    %c0_13 = arith.constant 0 : index
    %c0_14 = arith.constant 0 : index
    %18 = vector.load %arg7[%c0_13, %c0_14] : memref<8x128xf32, #tpu.memory_space<vmem>>, vector<8x128xf32>
    tpu.vector_store %arg7[%c0_13, %c0_14], %17 {strides = array<i32>} : memref<8x128xf32, #tpu.memory_space<vmem>>, vector<8x128xf32>,
    %c0_i32_15 = arith.constant 0 : i32
    %19 = arith.cmpi eq, %arg2, %c0_i32_15 : i32
    %20 = arith.extui %19 : i1 to i32
    %c0_i32_16 = arith.constant 0 : i32
    %21 = arith.cmpi ne, %20, %c0_i32_16 : i32
    scf.if %21 {
      %c0_17 = arith.constant 0 : index
      %c0_18 = arith.constant 0 : index
      %22 = vector.load %arg6[%c0_17, %c0_18] : memref<8x128xf32, #tpu.memory_space<vmem>>, vector<8x128xf32>
      %cst_19 = arith.constant dense<0.000000e+00> : vector<128xf32>
      %23 = vector.multi_reduction <add>, %22, %cst_19 [0] : vector<8x128xf32> to vector<128xf32>
      %24 = vector.shape_cast %23 : vector<128xf32> to vector<1x128xf32>
      %c0_20 = arith.constant 0 : index
      %c0_21 = arith.constant 0 : index
      %c0_22 = arith.constant 0 : index
      %c0_23 = arith.constant 0 : index
      %25 = vector.load %arg5[%c0_20, %c0_21, %c0_22, %c0_23] : memref<1x1x2x128xf32, #tpu.memory_space<vmem>>, vector<1x1x1x128xf32>
      %26 = vector.shape_cast %25 : vector<1x1x1x128xf32> to vector<1x128xf32>
      %27 = vector.shape_cast %24 : vector<1x128xf32> to vector<1x1x1x128xf32>
      tpu.vector_store %arg5[%c0_20, %c0_21, %c0_22, %c0_23], %27 {strides = array<i32>} : memref<1x1x2x128xf32, #tpu.memory_space<vmem>>, vector<1x1x1x128xf32>,
      %c0_24 = arith.constant 0 : index
      %c0_25 = arith.constant 0 : index
      %28 = vector.load %arg7[%c0_24, %c0_25] : memref<8x128xf32, #tpu.memory_space<vmem>>, vector<8x128xf32>
      %cst_26 = arith.constant dense<0.000000e+00> : vector<128xf32>
      %29 = vector.multi_reduction <add>, %28, %cst_26 [0] : vector<8x128xf32> to vector<128xf32>
      %30 = vector.shape_cast %29 : vector<128xf32> to vector<1x128xf32>
      %c0_27 = arith.constant 0 : index
      %c0_28 = arith.constant 0 : index
      %c1 = arith.constant 1 : index
      %c0_29 = arith.constant 0 : index
      %31 = vector.load %arg5[%c0_27, %c0_28, %c1, %c0_29] : memref<1x1x2x128xf32, #tpu.memory_space<vmem>>, vector<1x1x1x128xf32>
      %32 = vector.shape_cast %31 : vector<1x1x1x128xf32> to vector<1x128xf32>
      %33 = vector.shape_cast %30 : vector<1x128xf32> to vector<1x1x1x128xf32>
      tpu.vector_store %arg5[%c0_27, %c0_28, %c1, %c0_29], %33 {strides = array<i32>} : memref<1x1x2x128xf32, #tpu.memory_space<vmem>>, vector<1x1x1x128xf32>,
    } else {
    }
    return
  }
  func.func @transform_0(%arg0: i32, %arg1: i32, %arg2: i32) -> (i32, i32, i32) {
    %c1_i32 = arith.constant 1 : i32
    %0 = arith.muli %arg1, %c1_i32 : i32
    %1 = arith.addi %0, %arg2 : i32
    %c0_i32 = arith.constant 0 : i32
    %2 = arith.minsi %1, %c0_i32 : i32
    %c0_i32_0 = arith.constant 0 : i32
    %c0_i32_1 = arith.constant 0 : i32
    return %arg0, %2, %c0_i32_0 : i32, i32, i32
  }
  func.func @transform_1(%arg0: i32, %arg1: i32, %arg2: i32) -> (i32, i32, i32) {
    %c1_i32 = arith.constant 1 : i32
    %0 = arith.muli %arg1, %c1_i32 : i32
    %1 = arith.addi %0, %arg2 : i32
    %c0_i32 = arith.constant 0 : i32
    %2 = arith.minsi %1, %c0_i32 : i32
    %c0_i32_0 = arith.constant 0 : i32
    %c0_i32_1 = arith.constant 0 : i32
    return %arg0, %2, %c0_i32_0 : i32, i32, i32
  }
  func.func @transform_2(%arg0: i32, %arg1: i32, %arg2: i32) -> (i32, i32, i32, i32) {
    %c0_i32 = arith.constant 0 : i32
    %c0_i32_0 = arith.constant 0 : i32
    %c0_i32_1 = arith.constant 0 : i32
    return %arg0, %arg1, %c0_i32, %c0_i32_0 : i32, i32, i32, i32
  }
}

</mosaic_0001>

<bundles_post_ra>
// kernel: tpu_custom_call.1
= control target key start
LH: loop header
LB: loop body
LE: loop exit
PB: predicated region body
PF: predicated region fallthrough
CT: control target
= control target key end

     0   :  { %7 = vsyncpa [#allocation5], 0  ;;  %s817_s0 = inlined_call_operand.hbm [shape: f32[2,8,128], index: 0, kind: input, shape index: {}]   ;;  %s818_s1 = inlined_call_operand.hbm [shape: f32[2,8,128], index: 1, kind: input, shape index: {}]   ;;  %s819_s2 = inlined_call_operand.hbm [shape: f32[2,1,2,128], index: 2, kind: output, shape index: {}]  }
   0x1   :  { %9 = vsyncpa [#allocation5 + $0x1], 0 }
   0x2   :  { %10 = vsyncpa [#allocation8], 0 }
   0x3   :  { %12 = vsyncpa [#allocation8 + $0x1], 0 }
   0x4   :  { %13 = vsyncpa [#allocation6], 0 }
   0x5   :  { %15 = vsyncpa [#allocation6 + $0x1], 0  ;;  %s649_s9 = smov 0   ;;  %s651_s10 = smov 0  }
   0x6   :  { %s653_s11 = smov 0   ;;  %s655_s12 = smov 0  }
   0x7   :  { %s657_s13 = smov 0   ;;  %s659_s14 = smov 0  }
   0x8 LB: > { %s406_s15 = sadd.s32 4294967295, %s629_s14   ;;  %s407_s16 = sadd.s32 4294967294, %s629_s14   ;;  %s629_s14 = sphi %s659_s14, %s21_s14   ;;  %s625_s13 = sphi %s657_s13, %s831_s13   ;;  %s621_s12 = sphi %s655_s12, %s830_s12   ;;  %s617_s11 = sphi %s653_s11, %s829_s11   ;;  %s613_s10 = sphi %s651_s10, %s828_s10   ;;  %s609_s9 = sphi %s649_s9, %s827_s9  }
   0x9   : > { %s40_s17 = sadd.s32 1, %s625_s13  ;;  %s55_s18 = sadd.s32 1, %s617_s11 }
   0xa   : > { %p42_p0 = scmp.ge.s32.totalorder %s40_s17, 2  ;;  %p62_p1 = scmp.ne.s32.totalorder %s617_s11, %s613_s10 }
   0xb   : > { %p63_p2 = scmp.eq.s32.totalorder %s629_s14, 0  ;;  %p68_p3 = scmp.ne.s32.totalorder %s613_s10, %s609_s9 }
   0xc   : > { %s833_s17 = smov (%p42_p0, %s40_s17), 0  ;;  %p69_p5 = scmp.eq.s32.totalorder %s406_s15, 0 }
   0xd   : > { %p690_p4 = por %p63_p2, %p62_p1  ;;  %s50_s20 = ssub.s32 %s625_s13, %s833_s17 }
   0xe   : > { %p128_p6 = scmp.eq.s32.totalorder %s406_s15, 1  ;;  %p53_p7 = scmp.eq.s32.totalorder %s50_s20, 0 }
   0xf   : > { %p696_p8 = por %p69_p5, %p68_p3  ;;  %p134_p10 = scmp.eq.s32.totalorder %s407_s16, 1 }
  0x10   : > { %p700_p9 = por %p128_p6, %p62_p1  ;;  %p439_p13 = scmp.lt.s32.totalorder %s629_s14, 2 }
  0x11   : > { %s705_s23 = scalar_select %p53_p7, %s617_s11, %s55_s18  }
  0x12   : > { %p707_p11 = por %p134_p10, %p68_p3  ;;  %s714_s25 = sand.u32 1, %s617_s11  }
  0x13   : > { %s410_s26 = sshll.u32 %s714_s25, 3  ;;  %s411_s27 = sshll.u32 %s625_s13, 7 }
  0x14   : > { %s167_s30 = scalar_lea.hbm %s817_s0, %s411_s27  ;;  %s158_s3 = scalar_lea.vmem [#allocation4], %s410_s26 }
  0x15   : > { %s169_s4 = sshll.u32 %s158_s3, 4  ;;  %p723_p0 = pnand %p439_p13, %p690_p4  ;;  %s170_s4 = int_to_ptr.vmem [resolvable:$true] %s169_s4 }
  0x16   : > { %p414_p1 = scmp.ge.s32.totalorder %s629_s14, 1  ;;  %p196_p2 = scmp.lt.s32.totalorder %s629_s14, 3 }
  0x17   : > { %s155_s6 = scalar_lea.sflag [#allocation5], %s714_s25  ;;  %p491_p3 = pneg %p723_p0 }
  0x18   : > { %s502_s7 = scalar_lea.vmem %s170_s4, 128  ;;  %s631_s8 = smov [#allocation4]  }
  0x19   : > { %p503_p5 = scmp.ne.s32.totalorder %s170_s4, %s502_s7  ;;  %s507_s15 = sshll.u32 %s631_s8, 4  ;;  %s508_s15 = int_to_ptr.vmem [resolvable:$false] %s507_s15 }
  0x1a   : > { %s509_s16 = scalar_lea.vmem %s508_s15, 256  ;;  %p510_p4 = scmp.lt.s32.totalorder %s170_s4, %s508_s15 }
  0x1b   : > { %p505_p6 = pnand %p503_p5, %p491_p3  ;;  %p511_p10 = scmp.lt.s32.totalorder %s509_s16, %s502_s7 }
  0x1d   : > { %p506_p7 = pneg %p505_p6  ;;  %p512_p13 = por %p511_p10, %p510_p4 }
  0x1f   : > { %p513_p12 = pnand %p512_p13, %p506_p7 }
  0x21   : > { %516 = shalt.err (!%p513_p12)
}
  0x22   : > { %431 = dma.hbm_to_vmem [thread:$0]  (!%p723_p0), %s167_s30, 128, %s170_s4, %s155_s6  }
  0x23   : > { %p741_p5 = pnand %p414_p1, %p196_p2  ;;  %s189_s28 = scalar_lea.hbm %s818_s1, %s411_s27 }
  0x24   : > { %s180_s29 = scalar_lea.vmem [#allocation7], %s410_s26  ;;  %s177_s7 = scalar_lea.sflag [#allocation8], %s714_s25 }
  0x25   : > { %s191_s3 = sshll.u32 %s180_s29, 4  ;;  %s632_s30 = smov [#allocation7]   ;;  %s192_s3 = int_to_ptr.vmem [resolvable:$true] %s191_s3 }
  0x26   : > { %s530_s8 = scalar_lea.vmem %s192_s3, 128  ;;  %s535_s4 = sshll.u32 %s632_s30, 4  ;;  %s536_s4 = int_to_ptr.vmem [resolvable:$false] %s535_s4 }
  0x27   : > { %p531_p12 = scmp.ne.s32.totalorder %s192_s3, %s530_s8  ;;  %s537_s6 = scalar_lea.vmem %s536_s4, 256 }
  0x28   : > { %p538_p1 = scmp.lt.s32.totalorder %s192_s3, %s536_s4  ;;  %p539_p2 = scmp.lt.s32.totalorder %s537_s6, %s530_s8 }
  0x29   : > { %p533_p6 = pnand %p531_p12, %p491_p3 }
  0x2a   : > { %p540_p4 = por %p539_p2, %p538_p1 }
  0x2b   : > { %p534_p7 = pneg %p533_p6 }
  0x2d   : > { %p541_p10 = pnand %p540_p4, %p534_p7 }
  0x2f   : > { %544 = shalt.err (!%p541_p10)
}
  0x30   : > { %434 = dma.hbm_to_vmem [thread:$0]  (!%p723_p0), %s189_s28, 128, %s192_s3, %s177_s7  }
  0x31   : > { %200 = sbr.rel (%p741_p5) target bundleno = 85 (0x55), region = 28  ;;  %s757_s25 = sand.u32 (!%p741_p5), 1, %s613_s10  }
  0x32   : > { %s415_s26 = sshll.u32 (!%p741_p5), %s757_s25, 3  ;;  %s203_s27 = scalar_lea.sflag (!%p741_p5), [#allocation5], %s757_s25 }
  0x33   : > { %s206_s15 = scalar_lea.vmem (!%p741_p5), [#allocation4], %s415_s26 }
  0x36   : > { %596 = dma.done.wait (%p696_p8), %s203_s27, 128  }
  0x37   : > { %598 = vsyncadd (%p696_p8), %s203_s27, 4294967168  ;;  %s212_s5 = scalar_lea.sflag [#allocation8], %s757_s25  ;;  %s215_s16 = scalar_lea.vmem [#allocation7], %s415_s26 }
  0x38   : > { %600 = dma.done.wait (%p696_p8), %s212_s5, 128  }
  0x39   : > { %602 = vsyncadd (%p696_p8), %s212_s5, 4294967168  ;;  %v253_v0 = vld [vmem:[%s206_s15] sm:$0xff]  ;;  %v254_v1 = vld [vmem:[%s215_s16] sm:$0xff]  ;;  %s417_s18 = sshll.u32 %s757_s25, 1  ;;  %s419_s20 = sshll.u32 %s621_s12, 5 }
  0x3a   : > { %v255_v2 = vmul.f32 %v254_v1, %v253_v0  ;;  %v256_v3 = vadd.f32 %v254_v1, %v253_v0  ;;  %s240_s19 = scalar_lea.vmem [#allocation9], %s417_s18  ;;  %s297_s3 = scalar_lea.hbm %s819_s2, %s419_s20 }
  0x3b   : > { %s299_s21 = sshll.u32 %s240_s19, 4  ;;  %s285_s7 = scalar_lea.sflag [#allocation6], %s757_s25  ;;  %s772_s21 = int_to_ptr.vmem [resolvable:$true] %s299_s21 }
  0x3c   : > { %v269_v4 = vrot.slane %v255_v2, 4  ;;  %v277_v5 = vrot.slane %v256_v3, 4  ;;  %s545_s8 = scalar_lea.vmem %s772_s21, 32  ;;  %s633_s12 = smov [#allocation9]  }
  0x3d   : > { %p546_p8 = scmp.ne.s32.totalorder %s772_s21, %s545_s8  ;;  %s549_s30 = sshll.u32 %s633_s12, 4  ;;  %s550_s30 = int_to_ptr.vmem [resolvable:$false] %s549_s30 }
  0x3e   : > { %v270_v6 = vadd.f32 %v269_v4, %v255_v2  ;;  %v278_v7 = vadd.f32 %v277_v5, %v256_v3  ;;  %s551_s4 = scalar_lea.vmem %s550_s30, 64  ;;  %p552_p13 = scmp.lt.s32.totalorder %s772_s21, %s550_s30 }
  0x3f   : > { %p547_p0 = pnand %p546_p8, %p700_p9  ;;  %p553_p5 = scmp.lt.s32.totalorder %s551_s4, %s545_s8 }
  0x40   : > { %v271_v8 = vrot.slane %v270_v6, 2  ;;  %v279_v9 = vrot.slane %v278_v7, 2 }
  0x41   : > { %p548_p3 = pneg %p547_p0  ;;  %p554_p12 = por %p553_p5, %p552_p13 }
  0x42   : > { %v272_v10 = vadd.f32 %v271_v8, %v270_v6  ;;  %v280_v11 = vadd.f32 %v279_v9, %v278_v7 }
  0x43   : > { %p555_p6 = pnand %p554_p12, %p548_p3 }
  0x44   : > { %v273_v12 = vrot.slane %v272_v10, 1  ;;  %v281_v13 = vrot.slane %v280_v11, 1 }
  0x46   : > { %v274_v14 = vadd.f32 %v273_v12, %v272_v10  ;;  %v282_v15 = vadd.f32 %v281_v13, %v280_v11 }
  0x48   : > { %275 = vst [vmem:[%s240_s19] sm:$0x1] %v274_v14  ;;  %283 = vst [vmem:[%s240_s19 + $0x1] sm:$0x1] %v282_v15 }
  0x49   : > { %558 = shalt.err (!%p555_p6)
}
  0x4a   : > { %s559_s6 = scalar_lea.hbm %s297_s3, 32  ;;  %s563_s27 = scalar_lea.hbm %s819_s2, 64 }
  0x4b   : > { %p560_p7 = scmp.ne.s32.totalorder %s297_s3, %s559_s6  ;;  %p564_p4 = scmp.lt.s32.totalorder %s297_s3, %s819_s2 }
  0x4c   : > { %p565_p10 = scmp.lt.s32.totalorder %s563_s27, %s559_s6 }
  0x4d   : > { %p561_p1 = pnand %p560_p7, %p700_p9 }
  0x4e   : > { %p566_p8 = por %p565_p10, %p564_p4 }
  0x4f   : > { %p562_p2 = pneg %p561_p1 }
  0x51   : > { %p567_p0 = pnand %p566_p8, %p562_p2 }
  0x53   : > { %570 = shalt.err (!%p567_p0)
}
  0x54   : > { %426 = dma.vmem_to_hbm [thread:$0]  (%p700_p9), %s772_s21, 32, %s297_s3, %s285_s7  }
  0x55 PF: > { %s311_s16 = sand.u32 1, %s609_s9   ;;  %p826_p3 = scmp.ge.s32.totalorder %s629_s14, 2 }
  0x56   : > { %s312_s18 = scalar_lea.sflag [#allocation6], %s311_s16 }
  0x57   : > { %p436_p13 = pnand %p826_p3, %p707_p11 }
  0x59   : > { %p437_p5 = pneg %p436_p13 }
  0x5b   : > { %604 = dma.done.wait (%p437_p5), %s312_s18, 32  }
  0x5c   : > { %606 = vsyncadd (%p437_p5), %s312_s18, 4294967264  ;;  %s21_s14 = sadd.s32 1, %s629_s14   ;;  %s827_s9 = smov %s613_s10 }
  0x5d   : > { %p18_p12 = scmp.ge.s32.totalorder %s21_s14, 4   ;;  %s828_s10 = smov %s617_s11 }
  0x5e   : > { %s829_s11 = smov %s705_s23  ;;  %s830_s12 = smov %s625_s13 }
  0x5f   : > { %s831_s13 = smov %s833_s17  ;;  %20 = sbr.rel (!%p18_p12) target bundleno = 8 (0x8), region = 94 }
  0x64   :  { %317 = vsyncpa [#allocation5], 1 }
  0x65   :  { %319 = vsyncpa [#allocation5 + $0x1], 1 }
  0x66   :  { %320 = vsyncpa [#allocation8], 1 }
  0x67   :  { %322 = vsyncpa [#allocation8 + $0x1], 1 }
  0x68   :  { %323 = vsyncpa [#allocation6], 1 }
  0x69   :  { %325 = vsyncpa [#allocation6 + $0x1], 1 }

</bundles_post_ra>
